<compile_context>
chip_gen: v5e
topology: v5e:2x2
jax: 0.10.0
libtpu: 0.0.40
codegen_flags: <defaults>
</compile_context>

<pallas_src>
import functools
import math

import jax
import jax.numpy as jnp
import numpy as np
from jax.experimental import pallas as pl
from jax.experimental.pallas import tpu as pltpu

_LANE = 128
_SUBLANE = 8
_BLOCK_BUDGET_BYTES = 8 * 1024 * 1024    # per-block VMEM budget
_VMEM_LIMIT_BYTES = 48 * 1024 * 1024     # ~4x block bytes (in+out, double buffered) + slack


def _cdiv(a, b):
    return -(-a // b)


def _round_up(a, b):
    return _cdiv(a, b) * b


def _erf_approx(z):
    """Abramowitz & Stegun 7.1.26 erf, |abs err| <= 1.5e-7 (VPU ops + one EUP exp)."""
    az = jnp.abs(z)
    t = 1.0 / (1.0 + 0.3275911 * az)
    poly = ((((1.061405429 * t - 1.453152027) * t + 1.421413741) * t
             - 0.284496736) * t + 0.254829592) * t
    e = 1.0 - poly * jnp.exp(-az * az)
    return jnp.sign(z) * e


# ---------------------------------------------------------------------------
# Kernels
# ---------------------------------------------------------------------------

def _act_kernel(x_ref, o_ref, *, act_type):
    """x_ref / o_ref: (r_blk, 128) fully dense block of the flattened tensor."""
    x = x_ref[...]
    if act_type == "relu":
        y = jnp.maximum(x, 0)
    elif act_type == "leakyrelu":
        y = jnp.where(x >= 0, x, 0.2 * x)
    elif act_type == "silu":
        xf = x.astype(jnp.float32)
        y = xf * jax.nn.sigmoid(xf)
    elif act_type == "gelu":
        # Exact (erf) GELU, matching PyTorch nn.GELU() default.
        xf = x.astype(jnp.float32)
        y = 0.5 * xf * (1.0 + _erf_approx(xf * (1.0 / math.sqrt(2.0))))
    else:
        raise ValueError(f"activation type {act_type} not supported")
    o_ref[...] = y.astype(o_ref.dtype)


def _prelu_kernel(x_ref, alpha_ref, o_ref):
    """x_ref / o_ref: (1, c_blk, t_blk); alpha_ref: (c_blk, 1) per-channel slope."""
    x = x_ref[...]
    a = alpha_ref[...].astype(x.dtype)                 # (c_blk, 1)
    o_ref[...] = jnp.where(x >= 0, x, a[None, :, :] * x).astype(o_ref.dtype)


# ---------------------------------------------------------------------------
# Block-size selection (always bounded by the VMEM budget)
# ---------------------------------------------------------------------------

def _flat_blocks(total, itemsize):
    """Dense (rows, 128) layout: return (lane, rows_per_block, rows, padded_total)."""
    lane = _LANE
    padded_total = _round_up(total, lane)
    rows = padded_total // lane
    cap = max(_SUBLANE,
              (_BLOCK_BUDGET_BYTES // (lane * itemsize)) // _SUBLANE * _SUBLANE)
    r_blk = min(cap, _round_up(rows, _SUBLANE))
    # Guarantee >= 2 grid steps when there is enough work (v7x: 2 TCs/chip).
    if rows > _SUBLANE and _cdiv(rows, r_blk) < 2:
        r_blk = max(_SUBLANE, _round_up(_cdiv(rows, 2), _SUBLANE))
    if r_blk > rows:                                   # tiny input: full-extent block
        r_blk = rows
    return lane, r_blk, rows, padded_total


def _prelu_blocks(C, HW, itemsize):
    """(N, C, HW) layout: return (c_blk, t_blk); block = (1, c_blk, t_blk)."""
    budget = _BLOCK_BUDGET_BYTES
    if C * HW * itemsize <= budget:
        return C, HW                                   # whole image fits in one block
    # Prefer channel tiling with the full HW (fully contiguous per-block DMA).
    if _SUBLANE * HW * itemsize <= budget:
        c_blk = min(C, max(_SUBLANE,
                           (budget // (HW * itemsize)) // _SUBLANE * _SUBLANE))
        return c_blk, HW
    # Huge HW: tile the spatial (lane) dim in 128 multiples; tile C too if needed.
    t_blk = max(_LANE, (budget // (C * itemsize)) // _LANE * _LANE)
    if t_blk >= HW:
        t_blk = HW
    c_blk = C
    if C * t_blk * itemsize > budget:
        c_blk = min(C, max(_SUBLANE,
                           (budget // (t_blk * itemsize)) // _SUBLANE * _SUBLANE))
    return c_blk, t_blk


# ---------------------------------------------------------------------------
# Wrapper (ActLayer.forward)
# ---------------------------------------------------------------------------

def act_layer(x_nchw, relu_type="leakyrelu", prelu_weight=None):
    """ActLayer.forward. Input/output are NCHW (PyTorch layout)."""
    relu_type = relu_type.lower()
    if relu_type not in ("relu", "leakyrelu", "prelu", "none", "silu", "gelu"):
        raise ValueError(f"activation type {relu_type} not supported")

    if relu_type == "none":
        # Direct pass (matches `lambda x: x * 1.0`): no pointless HBM round trip.
        return x_nchw * 1.0

    N, C, H, W = x_nchw.shape
    itemsize = x_nchw.dtype.itemsize

    if relu_type == "prelu":
        if prelu_weight is None:
            raise ValueError("prelu requires a per-channel weight of shape (C,)")
        HW = H * W
        x3 = x_nchw.reshape(N, C, HW)                  # contiguous -> free reshape
        alpha = prelu_weight.reshape(C, 1).astype(x_nchw.dtype)
        c_blk, t_blk = _prelu_blocks(C, HW, itemsize)
        grid = (N, _cdiv(C, c_blk), _cdiv(HW, t_blk))
        x_spec = pl.BlockSpec((1, c_blk, t_blk), lambda n, c, t: (n, c, t))
        a_spec = pl.BlockSpec((c_blk, 1), lambda n, c, t: (c, 0))
        out = pl.pallas_call(
            _prelu_kernel,
            out_shape=jax.ShapeDtypeStruct((N, C, HW), x_nchw.dtype),
            grid=grid,
            in_specs=[x_spec, a_spec],
            out_specs=x_spec,
            compiler_params=pltpu.CompilerParams(
                dimension_semantics=("parallel", "parallel", "parallel"),
                vmem_limit_bytes=_VMEM_LIMIT_BYTES),
        )(x3, alpha)
        return out.reshape(N, C, H, W)

    # relu / leakyrelu / silu / gelu: position-independent -> flatten to a dense
    # lane/sublane-saturated 2D slab.
    total = N * C * H * W
    lane, r_blk, rows, padded_total = _flat_blocks(total, itemsize)
    x_flat = x_nchw.reshape(-1)
    if padded_total != total:
        x_flat = jnp.pad(x_flat, (0, padded_total - total))
    x2d = x_flat.reshape(rows, lane)
    grid = (_cdiv(rows, r_blk),)
    spec = pl.BlockSpec((r_blk, lane), lambda i: (i, 0))
    out2d = pl.pallas_call(
        functools.partial(_act_kernel, act_type=relu_type),
        out_shape=jax.ShapeDtypeStruct((rows, lane), x_nchw.dtype),
        grid=grid,
        in_specs=[spec],
        out_specs=spec,
        compiler_params=pltpu.CompilerParams(
            dimension_semantics=("parallel",),
            vmem_limit_bytes=_VMEM_LIMIT_BYTES),
    )(x2d)
    out = out2d.reshape(-1)
    if padded_total != total:
        out = out[:total]
    return out.reshape(N, C, H, W)


# ---------------------------------------------------------------------------
# Pure-JAX reference (mirrors the PyTorch module exactly)
# ---------------------------------------------------------------------------

def reference_forward(x, relu_type="leakyrelu", prelu_weight=None):
    relu_type = relu_type.lower()
    if relu_type == "relu":
        return jnp.maximum(x, 0.0)
    if relu_type == "leakyrelu":
        return jnp.where(x >= 0, x, 0.2 * x)
    if relu_type == "prelu":
        a = prelu_weight[None, :, None, None]
        return jnp.where(x >= 0, x, a * x)
    if relu_type == "none":
        return x * 1.0
    if relu_type == "silu":
        return x * jax.nn.sigmoid(x)
    if relu_type == "gelu":
        return jax.nn.gelu(x, approximate=False)       # exact erf GELU
    raise ValueError(f"activation type {relu_type} not supported")


if __name__ == "__main__":
    N, C, H, W = 2, 4, 16, 16
    key = jax.random.PRNGKey(0)
    kx, ka = jax.random.split(key)
    x = jax.random.normal(kx, (N, C, H, W), jnp.float32)
    # PyTorch nn.PReLU(C) initializes to 0.25 per channel; perturb it so the
    # per-channel broadcast is actually exercised.
    prelu_w = 0.25 + 0.1 * jax.random.normal(ka, (C,), jnp.float32)

    for relu_type in ("leakyrelu", "relu", "prelu", "none", "silu", "gelu"):
        w = prelu_w if relu_type == "prelu" else None
        out = jax.block_until_ready(act_layer(x, relu_type, w))
        ref = jax.block_until_ready(reference_forward(x, relu_type, w))
        assert out.shape == x.shape
        np.testing.assert_allclose(np.asarray(out), np.asarray(ref),
                                   atol=1e-5, rtol=1e-5,
                                   err_msg=f"mismatch for {relu_type}")

    print("KERNEL_OK")
</pallas_src>

<mosaic_0001>
module attributes {stable_mosaic.version = 11 : i64} {
  func.func @_act_kernel(%arg0: i32, %arg1: memref<8x128xf32, #tpu.memory_space<vmem>>, %arg2: memref<8x128xf32, #tpu.memory_space<vmem>>) attributes {dimension_semantics = [#tpu.dimension_semantics<parallel>], iteration_bounds = array<i64: 2>, scalar_prefetch = 0 : i64, scratch_operands = 0 : i64, tpu.core_type = #tpu.core_type<tc>, window_params = [{transform_indices = @transform_0, window_bounds = array<i64: 8, 128>}, {transform_indices = @transform_1, window_bounds = array<i64: 8, 128>}]} {
    %c0 = arith.constant 0 : index
    %c0_0 = arith.constant 0 : index
    %0 = vector.load %arg1[%c0, %c0_0] : memref<8x128xf32, #tpu.memory_space<vmem>>, vector<8x128xf32>
    %cst = arith.constant 0.000000e+00 : f32
    %1 = vector.broadcast %cst : f32 to vector<8x128xf32>
    %2 = arith.cmpf oge, %0, %1 : vector<8x128xf32>
    %cst_1 = arith.constant 2.000000e-01 : f32
    %3 = vector.broadcast %cst_1 : f32 to vector<8x128xf32>
    %4 = arith.mulf %3, %0 : vector<8x128xf32>
    %5 = arith.select %2, %0, %4 : vector<8x128xi1>, vector<8x128xf32>
    %c0_2 = arith.constant 0 : index
    %c0_3 = arith.constant 0 : index
    %6 = vector.load %arg2[%c0_2, %c0_3] : memref<8x128xf32, #tpu.memory_space<vmem>>, vector<8x128xf32>
    tpu.vector_store %arg2[%c0_2, %c0_3], %5 {strides = array<i32>} : memref<8x128xf32, #tpu.memory_space<vmem>>, vector<8x128xf32>,
    return
  }
  func.func @transform_0(%arg0: i32) -> (i32, i32) {
    %c0_i32 = arith.constant 0 : i32
    %c0_i32_0 = arith.constant 0 : i32
    return %arg0, %c0_i32 : i32, i32
  }
  func.func @transform_1(%arg0: i32) -> (i32, i32) {
    %c0_i32 = arith.constant 0 : i32
    %c0_i32_0 = arith.constant 0 : i32
    return %arg0, %c0_i32 : i32, i32
  }
}

</mosaic_0001>

<bundles_post_ra>
// kernel: tpu_custom_call.1
= control target key start
LH: loop header
LB: loop body
LE: loop exit
PB: predicated region body
PF: predicated region fallthrough
CT: control target
= control target key end

     0   :  { %6 = vsyncpa [#allocation3], 0  ;;  %s518_s0 = inlined_call_operand.hbm [shape: f32[16,128], index: 0, kind: input, shape index: {}]   ;;  %s519_s1 = inlined_call_operand.hbm [shape: f32[16,128], index: 1, kind: output, shape index: {}]  }
   0x1   :  { %8 = vsyncpa [#allocation3 + $0x1], 0 }
   0x2   :  { %9 = vsyncpa [#allocation4], 0 }
   0x3   :  { %11 = vsyncpa [#allocation4 + $0x1], 0  ;;  %s391_s6 = smov 0   ;;  %s393_s7 = smov 0  }
   0x4   :  { %s395_s8 = smov 0   ;;  %s397_s9 = smov 0  }
   0x5 LB: > { %s412_s10 = sadd.s32 4294967295, %s379_s9   ;;  %s225_s11 = sadd.s32 4294967294, %s379_s9   ;;  %s379_s9 = sphi %s397_s9, %s529_s9   ;;  %s375_s8 = sphi %s395_s8, %s528_s8   ;;  %s371_s7 = sphi %s393_s7, %s527_s7   ;;  %s367_s6 = sphi %s391_s6, %s526_s6  }
   0x6   : > { %s416_s12 = sadd.s32 1, %s379_s9   ;;  %s24_s13 = sadd.s32 1, %s375_s8 }
   0x7   : > { %s21_s14 = ssub.s32 %s379_s9, %s416_s12  ;;  %p31_p0 = scmp.ne.s32.totalorder %s375_s8, %s371_s7 }
   0x8   : > { %p22_p1 = scmp.eq.s32.totalorder %s21_s14, 0  ;;  %p32_p2 = scmp.eq.s32.totalorder %s379_s9, 0 }
   0x9   : > { %p37_p3 = scmp.ne.s32.totalorder %s371_s7, %s367_s6  ;;  %p38_p4 = scmp.eq.s32.totalorder %s412_s10, 0 }
   0xa   : > { %s428_s15 = scalar_select %p22_p1, %s375_s8, %s24_s13  }
   0xb   : > { %p430_p5 = por %p32_p2, %p31_p0  ;;  %p434_p6 = por %p38_p4, %p37_p3 }
   0xc   : > { %p61_p7 = scmp.eq.s32.totalorder %s412_s10, 1  ;;  %p67_p8 = scmp.eq.s32.totalorder %s225_s11, 1 }
   0xd   : > { %p249_p10 = scmp.lt.s32.totalorder %s379_s9, 2  ;;  %s87_s20 = sand.u32 1, %s375_s8  }
   0xe   : > { %p441_p11 = por %p61_p7, %p31_p0  ;;  %p445_p12 = por %p67_p8, %p37_p3 }
   0xf   : > { %s229_s21 = sshll.u32 %s379_s9, 3  ;;  %s228_s22 = sshll.u32 %s87_s20, 3 }
  0x10   : > { %s95_s25 = scalar_lea.hbm %s518_s0, %s229_s21  ;;  %s91_s27 = scalar_lea.vmem [#allocation2], %s228_s22 }
  0x11   : > { %s97_s26 = sshll.u32 %s95_s25, 4  ;;  %s99_s28 = sshll.u32 %s91_s27, 4  ;;  %s98_s26 = int_to_ptr.hbm [resolvable:$true] %s97_s26  ;;  %s100_s28 = int_to_ptr.vmem [resolvable:$true] %s99_s28 }
  0x12   : > { %p456_p13 = pnand %p249_p10, %p430_p5  ;;  %p230_p0 = scmp.ge.s32.totalorder %s379_s9, 1 }
  0x13   : > { %p104_p1 = scmp.lt.s32.totalorder %s379_s9, 3  ;;  %s88_s30 = scalar_lea.sflag [#allocation3], %s87_s20 }
  0x14   : > { %s283_s2 = sshra.s32 %s98_s26, 4  ;;  %p287_p3 = pneg %p456_p13  ;;  %s284_s2 = int_to_ptr.hbm [resolvable:$true] %s283_s2 }
  0x15   : > { %s285_s3 = scalar_lea.hbm %s284_s2, 8  ;;  %s290_s11 = scalar_lea.hbm %s518_s0, 16 }
  0x16   : > { %p286_p2 = scmp.ne.s32.totalorder %s284_s2, %s285_s3  ;;  %p291_p5 = scmp.lt.s32.totalorder %s284_s2, %s518_s0 }
  0x17   : > { %p292_p8 = scmp.lt.s32.totalorder %s290_s11, %s285_s3 }
  0x18   : > { %p288_p4 = pnand %p287_p3, %p286_p2 }
  0x19   : > { %p293_p10 = por %p292_p8, %p291_p5 }
  0x1a   : > { %p289_p7 = pneg %p288_p4 }
  0x1c   : > { %p294_p9 = pnand %p293_p10, %p289_p7 }
  0x1e   : > { %297 = shalt.err (!%p294_p9)
}
  0x1f   : > { %244 = dma.hbm_to_vmem [thread:$0]  (!%p456_p13), %s98_s26, 128, %s100_s28, %s88_s30  }
  0x20   : > { %p105_p2 = pnand %p230_p0, %p104_p1 }
  0x21   : > { %s477_s16 = sand.u32 (!%p105_p2), 1, %s371_s7  }
  0x22   : > { %108 = sbr.rel (%p105_p2) target bundleno = 55 (0x37), region = 24  ;;  %s231_s20 = sshll.u32 (!%p105_p2), %s477_s16, 3 }
  0x23   : > { %s111_s21 = scalar_lea.sflag (!%p105_p2), [#allocation3], %s477_s16  ;;  %s114_s22 = scalar_lea.vmem (!%p105_p2), [#allocation2], %s231_s20 }
  0x27   : > { %358 = dma.done.wait (%p434_p6), %s111_s21, 128  }
  0x28   : > { %360 = vsyncadd (%p434_p6), %s111_s21, 4294967168  ;;  %s234_s23 = sshll.u32 %s412_s10, 3  ;;  %s133_s27 = scalar_lea.vmem [#allocation5], %s231_s20  ;;  %v134_v0 = vld [vmem:[%s114_s22] sm:$0xff] }
  0x29   : > { %s150_s26 = scalar_lea.hbm %s519_s1, %s234_s23  ;;  %s152_s28 = sshll.u32 %s133_s27, 4  ;;  %vm135_vm0 = vcmp.ge.f32.partialorder %v134_v0, 0.0  ;;  %v136_v1 = vmul.f32 0.2, %v134_v0  ;;  %s153_s28 = int_to_ptr.vmem [resolvable:$true] %s152_s28 }
  0x2a   : > { %s154_s29 = sshll.u32 %s150_s26, 4  ;;  %s140_s17 = scalar_lea.sflag [#allocation4], %s477_s16  ;;  %s155_s29 = int_to_ptr.hbm [resolvable:$true] %s154_s29 }
  0x2b   : > { %v137_v2 = vsel %vm135_vm0, %v134_v0, %v136_v1  ;;  %s327_s30 = sshra.s32 %s155_s29, 4  ;;  %s333_s4 = scalar_lea.hbm %s519_s1, 16  ;;  %s328_s30 = int_to_ptr.hbm [resolvable:$true] %s327_s30 }
  0x2c   : > { %138 = vst [vmem:[%s133_s27] sm:$0xff] %v137_v2  ;;  %s329_s2 = scalar_lea.hbm %s328_s30, 8  ;;  %p334_p0 = scmp.lt.s32.totalorder %s328_s30, %s519_s1 }
  0x2d   : > { %p330_p6 = scmp.ne.s32.totalorder %s328_s30, %s329_s2  ;;  %p335_p1 = scmp.lt.s32.totalorder %s333_s4, %s329_s2 }
  0x2f   : > { %p331_p9 = pnand %p330_p6, %p441_p11  ;;  %p336_p3 = por %p335_p1, %p334_p0 }
  0x31   : > { %p332_p13 = pneg %p331_p9 }
  0x33   : > { %p337_p4 = pnand %p336_p3, %p332_p13 }
  0x35   : > { %340 = shalt.err (!%p337_p4)
}
  0x36   : > { %239 = dma.vmem_to_hbm [thread:$0]  (%p441_p11), %s153_s28, 128, %s155_s29, %s140_s17  }
  0x37 PF: > { %s166_s13 = sand.u32 1, %s367_s6   ;;  %p525_p7 = scmp.ge.s32.totalorder %s379_s9, 2 }
  0x38   : > { %s167_s14 = scalar_lea.sflag [#allocation4], %s166_s13 }
  0x39   : > { %p246_p5 = pnand %p525_p7, %p445_p12 }
  0x3b   : > { %p247_p8 = pneg %p246_p5 }
  0x3d   : > { %362 = dma.done.wait (%p247_p8), %s167_s14, 128  }
  0x3e   : > { %364 = vsyncadd (%p247_p8), %s167_s14, 4294967168  ;;  %p14_p10 = scmp.ge.s32.totalorder %s416_s12, 4   ;;  %s526_s6 = smov %s371_s7 }
  0x3f   : > { %s527_s7 = smov %s375_s8  ;;  %s528_s8 = smov %s428_s15 }
  0x40   : > { %s529_s9 = smov %s416_s12  ;;  %16 = sbr.rel (!%p14_p10) target bundleno = 5 (0x5), region = 69 }
  0x45   :  { %173 = vsyncpa [#allocation3], 1 }
  0x46   :  { %175 = vsyncpa [#allocation3 + $0x1], 1 }
  0x47   :  { %176 = vsyncpa [#allocation4], 1 }
  0x48   :  { %178 = vsyncpa [#allocation4 + $0x1], 1 }

</bundles_post_ra>
